<compile_context>
chip_gen: v7x
topology: tpu7x:2x2x1
jax: 0.10.0
libtpu: 0.0.40
codegen_flags: <defaults>
</compile_context>

<pallas_src>
import math

import jax
import jax.numpy as jnp
from jax.experimental import pallas as pl
from jax.experimental.pallas import tpu as pltpu


def _qkv_field_kernel(xb_ref, w_ref, o_ref):
    # xb_ref: (TB, F, F3D)   featureVec pre-broadcast along (f2, qkv)
    # w_ref:  (H,  F, F3D)   all heads, VMEM-resident across the whole grid
    # o_ref:  (TB, H, F, F3D)
    # Pure VPU elementwise multiply; broadcasts are along major dims only
    # (H for x, TB for w), so every store is a dense, lane-aligned tile.
    o_ref[...] = xb_ref[...][:, None, :, :] * w_ref[...][None, :, :, :]


def _pick_tb(B, per_b_out_bytes, per_b_x_bytes, w_bytes,
             target_out_bytes=2 << 20, vmem_budget=40 << 20):
    """Batch-chunk size: ~target-sized output tiles, divides B, keeps >= 2 grid
    steps when possible (v7x megacore), and fits a conservative VMEM budget."""
    tb = max(1, min(B, target_out_bytes // max(per_b_out_bytes, 1)))

    def fits(t):
        # double-buffered x & out blocks + (conservatively) 2x resident weight
        return 2 * t * (per_b_out_bytes + per_b_x_bytes) + 2 * w_bytes <= vmem_budget

    while tb > 1 and (B % tb != 0 or B // tb < 2 or not fits(tb)):
        tb -= 1
    return tb


def qkv_field_transform(feature_vec: jax.Array, weight: jax.Array) -> jax.Array:
    """feature_vec: (B, F, D) f32; weight: (H, F, F, 3, D) f32.
    Returns (B, H, F, F, 3, D) f32, matching QKVFieldTransformV2.forward."""
    B, F, D = feature_vec.shape
    H, Fw, Fw2, three, Dw = weight.shape
    assert F == Fw == Fw2 and D == Dw and three == 3

    feature_vec = feature_vec.astype(jnp.float32)
    weight = weight.astype(jnp.float32)

    F3D = F * 3 * D
    itemsize = 4

    # Lane-dense HBM layouts: trailing (f2, qkv, d) dims flattened into one axis.
    w_flat = weight.reshape(H, F, F3D)                  # (H, F, F*3*D)
    # Pre-broadcast featureVec along the (f2, qkv) axis: element j -> d = j % D.
    x_bcast = jnp.tile(feature_vec, (1, 1, 3 * F))      # (B, F, F*3*D)

    per_b_out = H * F * F3D * itemsize
    per_b_x = F * F3D * itemsize
    w_bytes = H * F * F3D * itemsize
    TB = _pick_tb(B, per_b_out, per_b_x, w_bytes)
    num_chunks = B // TB

    vmem_needed = 2 * TB * (per_b_out + per_b_x) + 2 * w_bytes
    vmem_limit = int(min(max(vmem_needed + (4 << 20), 32 << 20), 64 << 20))

    cost = pl.CostEstimate(
        flops=B * H * F * F * 3 * D,   # one multiply per output element
        transcendentals=0,
        bytes_accessed=itemsize * (B * F * F3D + H * F * F3D + B * H * F * F3D),
    )

    out_flat = pl.pallas_call(
        _qkv_field_kernel,
        out_shape=jax.ShapeDtypeStruct((B, H, F, F3D), jnp.float32),
        grid=(num_chunks,),
        in_specs=[
            pl.BlockSpec((TB, F, F3D), lambda i: (i, 0, 0)),   # x chunk (streamed)
            pl.BlockSpec((H, F, F3D), lambda i: (0, 0, 0)),    # weight (resident)
        ],
        out_specs=pl.BlockSpec((TB, H, F, F3D), lambda i: (i, 0, 0, 0)),
        compiler_params=pltpu.CompilerParams(
            dimension_semantics=("parallel",),
            vmem_limit_bytes=vmem_limit,
        ),
        cost_estimate=cost,
    )(x_bcast, w_flat)

    return out_flat.reshape(B, H, F, F, 3, D)


def init_weight(key, head_num: int, feature_numb: int, in_dim: int) -> jax.Array:
    """Deterministic xavier_uniform init matching
    nn.init.xavier_uniform_(weight, gain=1.414) on a (H, F, F, 3, D) tensor."""
    gain = 1.414
    receptive = feature_numb * 3 * in_dim          # prod of dims[2:]
    fan_in = feature_numb * receptive              # size(1) * receptive
    fan_out = head_num * receptive                 # size(0) * receptive
    bound = gain * math.sqrt(6.0 / (fan_in + fan_out))
    return jax.random.uniform(
        key,
        (head_num, feature_numb, feature_numb, 3, in_dim),
        minval=-bound,
        maxval=bound,
        dtype=jnp.float32,
    )


if __name__ == "__main__":
    # Small shapes consistent with the module: batch=2, heads=2, features=4, inDim=32
    B, H, F, D = 2, 2, 4, 32

    key = jax.random.PRNGKey(0)
    k_w, k_x = jax.random.split(key)

    weight = init_weight(k_w, H, F, D)                            # (H, F, F, 3, D)
    feature_vec = jax.random.normal(k_x, (B, F, D), jnp.float32)  # (B, F, D)

    fwd = jax.jit(qkv_field_transform)
    out = jax.block_until_ready(fwd(feature_vec, weight))

    # Pure-JAX reference (mirrors the PyTorch broadcast exactly).
    ref = feature_vec[:, None, :, None, None, :] * weight[None]
    assert out.shape == (B, H, F, F, 3, D)
    assert jnp.allclose(out, ref, atol=1e-6, rtol=1e-6)

    print("KERNEL_OK")
</pallas_src>

<mosaic_0001>
module attributes {stable_mosaic.version = 11 : i64} {
  func.func @_qkv_field_kernel(%arg0: i32, %arg1: memref<1x4x384xf32, #tpu.memory_space<vmem>>, %arg2: memref<2x4x384xf32, #tpu.memory_space<vmem>>, %arg3: memref<1x2x4x384xf32, #tpu.memory_space<vmem>>) attributes {dimension_semantics = [#tpu.dimension_semantics<parallel>], iteration_bounds = array<i64: 2>, scalar_prefetch = 0 : i64, scratch_operands = 0 : i64, tpu.core_type = #tpu.core_type<tc>, window_params = [{transform_indices = @transform_0, window_bounds = array<i64: 1, 4, 384>}, {pipeline_mode = #tpu.pipeline_mode<synchronous>, transform_indices = @transform_1, window_bounds = array<i64: 2, 4, 384>}, {transform_indices = @transform_2, window_bounds = array<i64: 1, 2, 4, 384>}]} {
    %c0 = arith.constant 0 : index
    %c0_0 = arith.constant 0 : index
    %c0_1 = arith.constant 0 : index
    %0 = vector.load %arg1[%c0, %c0_0, %c0_1] : memref<1x4x384xf32, #tpu.memory_space<vmem>>, vector<1x4x384xf32>
    %1 = vector.shape_cast %0 : vector<1x4x384xf32> to vector<1x1x4x384xf32>
    %c0_2 = arith.constant 0 : index
    %c0_3 = arith.constant 0 : index
    %c0_4 = arith.constant 0 : index
    %2 = vector.load %arg2[%c0_2, %c0_3, %c0_4] : memref<2x4x384xf32, #tpu.memory_space<vmem>>, vector<2x4x384xf32>
    %3 = vector.shape_cast %2 : vector<2x4x384xf32> to vector<1x2x4x384xf32>
    %4 = vector.broadcast %1 : vector<1x1x4x384xf32> to vector<1x2x4x384xf32>
    %5 = arith.mulf %4, %3 : vector<1x2x4x384xf32>
    %c0_5 = arith.constant 0 : index
    %c0_6 = arith.constant 0 : index
    %c0_7 = arith.constant 0 : index
    %c0_8 = arith.constant 0 : index
    %6 = vector.load %arg3[%c0_5, %c0_6, %c0_7, %c0_8] : memref<1x2x4x384xf32, #tpu.memory_space<vmem>>, vector<1x2x4x384xf32>
    tpu.vector_store %arg3[%c0_5, %c0_6, %c0_7, %c0_8], %5 {strides = array<i32>} : memref<1x2x4x384xf32, #tpu.memory_space<vmem>>, vector<1x2x4x384xf32>,
    return
  }
  func.func @transform_0(%arg0: i32) -> (i32, i32, i32) {
    %c0_i32 = arith.constant 0 : i32
    %c0_i32_0 = arith.constant 0 : i32
    %c0_i32_1 = arith.constant 0 : i32
    return %arg0, %c0_i32, %c0_i32_0 : i32, i32, i32
  }
  func.func @transform_1(%arg0: i32) -> (i32, i32, i32) {
    %c0_i32 = arith.constant 0 : i32
    %c0_i32_0 = arith.constant 0 : i32
    %c0_i32_1 = arith.constant 0 : i32
    %c0_i32_2 = arith.constant 0 : i32
    return %c0_i32, %c0_i32_0, %c0_i32_1 : i32, i32, i32
  }
  func.func @transform_2(%arg0: i32) -> (i32, i32, i32, i32) {
    %c0_i32 = arith.constant 0 : i32
    %c0_i32_0 = arith.constant 0 : i32
    %c0_i32_1 = arith.constant 0 : i32
    %c0_i32_2 = arith.constant 0 : i32
    return %arg0, %c0_i32, %c0_i32_0, %c0_i32_1 : i32, i32, i32, i32
  }
}

</mosaic_0001>

<bundles_post_ra>
// kernel: tile.9
= control target key start
LH: loop header
LB: loop body
LE: loop exit
PB: predicated region body
PF: predicated region fallthrough
CT: control target
= control target key end

     0   :  { %s41_s6 = smov 3  ;;  %s44_s7 = smov 12  ;;  %vm46_vm0 = vcmask 1043458   ;;  %vm51_vm1 = vcmask 1045508   ;;  %vm56_vm2 = vcmask 1047558   ;;  %vm3_vm3 = vcmask 261120   ;;  %s550_s0 = inlined_call_operand.vmem [shape: f32[2,4,12,32], index: 0, kind: input, shape index: {}]   ;;  %s551_s1 = inlined_call_operand.vmem [shape: f32[2,4,384], index: 1, kind: output, shape index: {}]  }
   0x1   :  { %v308_v0 = vld [vmem:[%s550_s0 + $0x3] ss:$16 sm:%s41_s6]   ;;  %s49_s12 = smov 48  ;;  %s54_s13 = smov 192  ;;  %vm60_vm4 = vcmask 1048320   ;;  %vm134_vm5 = vcmask 785920  }
   0x2   :  { %v309_v1 = vld [vmem:[%s550_s0 + $0x3] ss:$16 sm:%s44_s7]   ;;  %v310_v3 = vld [vmem:[%s550_s0 - $0x39] ss:$16 sm:%s49_s12]   ;;  %s90_s18 = smov 3  ;;  %s93_s21 = smov 12 }
   0x3   :  { %v47_v2 = vsel %vm46_vm0, %v309_v1, %v308_v0  ;;  %v311_v4 = vld [vmem:[%s550_s0 - $0x39] ss:$16 sm:%s54_s13]   ;;  %v316_v6 = vld [vmem:[%s550_s0 + $0xb] ss:$16 sm:%s90_s18]   ;;  %s98_s22 = smov 48  ;;  %s103_s27 = smov 192 }
   0x4   :  { %v52_v5 = vsel %vm51_vm1, %v310_v3, %v47_v2  ;;  %v317_v8 = vld [vmem:[%s550_s0 + $0xb] ss:$16 sm:%s93_s21]   ;;  %v318_v9 = vld [vmem:[%s550_s0 + $0x3] ss:$16 sm:%s98_s22]   ;;  %s65_s28 = smov 3  ;;  %s352_s29 = smov 96  }
   0x5   :  { %v57_v7 = vsel %vm56_vm2, %v311_v4, %v52_v5  ;;  %v96_v10 = vsel %vm46_vm0, %v317_v8, %v316_v6  ;;  %v319_v11 = vld [vmem:[%s550_s0 + $0x3] ss:$16 sm:%s103_s27]   ;;  %s68_s3 = smov 12  ;;  %s73_s4 = smov 48  ;;  %v312_v13 = vld [vmem:[%s550_s0 + $0x47] ss:$16 sm:%s65_s28]  }
   0x6   :  { %58 = vrot.lane.b32.xlu0 %v57_v7, %s352_s29  ;;  %v101_v12 = vsel %vm51_vm1, %v318_v9, %v96_v10  ;;  %v313_v14 = vld [vmem:[%s550_s0 + $0x47] ss:$16 sm:%s68_s3]   ;;  %s78_s9 = smov 192  ;;  %s115_s10 = smov 3  ;;  %vm208_vm6 = vcmask 523520  }
   0x7   :  { %v106_v15 = vsel %vm56_vm2, %v319_v11, %v101_v12  ;;  %v71_v16 = vsel %vm46_vm0, %v313_v14, %v312_v13  ;;  %v314_v17 = vld [vmem:[%s550_s0 + $0xb] ss:$16 sm:%s73_s4]   ;;  %s118_s15 = smov 12  ;;  %s123_s16 = smov 48  ;;  %v320_v20 = vld [vmem:[%s550_s0 + $0x2] ss:$16 sm:%s115_s10]  }
   0x8   :  { %v315_v18 = vld [vmem:[%s550_s0 + $0xb] ss:$16 sm:%s78_s9]   ;;  %107 = vrot.lane.b32.xlu1 %v106_v15, %s352_s29  ;;  %v76_v19 = vsel %vm51_vm1, %v314_v17, %v71_v16  ;;  %s128_s19 = smov 192  ;;  %s139_s24 = smov 3 }
   0x9   :  { %v81_v21 = vsel %vm56_vm2, %v315_v18, %v76_v19  ;;  %v321_v22 = vld [vmem:[%s550_s0 + $0x2] ss:$16 sm:%s118_s15]   ;;  %v322_v23 = vld [vmem:[%s550_s0 - $0x3a] ss:$16 sm:%s123_s16]   ;;  %s142_s25 = smov 12  ;;  %s147_s28 = smov 48 }
   0xa   :  { %82 = vrot.lane.b32.xlu0 %v81_v21, %s352_s29  ;;  %v121_v24 = vsel %vm46_vm0, %v321_v22, %v320_v20  ;;  %v323_v25 = vld [vmem:[%s550_s0 - $0x3a] ss:$16 sm:%s128_s19]   ;;  %s152_s29 = smov 192  ;;  %s164_s5 = smov 3 }
   0xb   :  { %v126_v26 = vsel %vm51_vm1, %v322_v23, %v121_v24  ;;  %v324_v27 = vld [vmem:[%s550_s0 + $0x46] ss:$16 sm:%s139_s24]   ;;  %s167_s6 = smov 12  ;;  %v326_v31 = vld [vmem:[%s550_s0 + $0xa] ss:$16 sm:%s147_s28]   ;;  %s172_s11 = smov 48 }
   0xc   :  { %v325_v28 = vld [vmem:[%s550_s0 + $0x46] ss:$16 sm:%s142_s25]   ;;  %v131_v29 = vsel %vm56_vm2, %v323_v25, %v126_v26  ;;  %v327_v32 = vld [vmem:[%s550_s0 + $0xa] ss:$16 sm:%s152_s29]   ;;  %s177_s12 = smov 192  ;;  %s353_s13 = smov 64  }
   0xd   :  { %v145_v30 = vsel %vm46_vm0, %v325_v28, %v324_v27  ;;  %132 = vrot.lane.b32.xlu1 %v131_v29, %s353_s13  ;;  %v328_v34 = vld [vmem:[%s550_s0 + $0xa] ss:$16 sm:%s164_s5]   ;;  %s189_s16 = smov 3  ;;  %s192_s17 = smov 12 }
   0xe   :  { %v150_v33 = vsel %vm51_vm1, %v326_v31, %v145_v30  ;;  %v329_v36 = vld [vmem:[%s550_s0 + $0xa] ss:$16 sm:%s167_s6]   ;;  %v330_v37 = vld [vmem:[%s550_s0 + $0x2] ss:$16 sm:%s172_s11]   ;;  %s197_s22 = smov 48  ;;  %s202_s23 = smov 192 }
   0xf   :  { %v155_v35 = vsel %vm56_vm2, %v327_v32, %v150_v33  ;;  %v170_v38 = vsel %vm46_vm0, %v329_v36, %v328_v34  ;;  %v331_v39 = vld [vmem:[%s550_s0 + $0x2] ss:$16 sm:%s177_s12]   ;;  %s213_s26 = smov 3  ;;  %v332_v41 = vld [vmem:[%s550_s0 + $0x1] ss:$16 sm:%s189_s16]   ;;  %s216_s2 = smov 12 }
  0x10   :  { %156 = vrot.lane.b32.xlu0 %v155_v35, %s353_s13  ;;  %v175_v40 = vsel %vm51_vm1, %v330_v37, %v170_v38  ;;  %v333_v42 = vld [vmem:[%s550_s0 + $0x1] ss:$16 sm:%s192_s17]   ;;  %s221_s3 = smov 48  ;;  %s226_s8 = smov 192 }
  0x11   :  { %v180_v43 = vsel %vm56_vm2, %v331_v39, %v175_v40  ;;  %v195_v44 = vsel %vm46_vm0, %v333_v42, %v332_v41  ;;  %v334_v45 = vld [vmem:[%s550_s0 - $0x3b] ss:$16 sm:%s197_s22]   ;;  %s238_s11 = smov 3  ;;  %s241_s12 = smov 12  ;;  %v338_v51 = vld [vmem:[%s550_s0 + $0x9] ss:$16 sm:%s221_s3]  }
  0x12   :  { %v335_v46 = vld [vmem:[%s550_s0 - $0x3b] ss:$16 sm:%s202_s23]   ;;  %181 = vrot.lane.b32.xlu1 %v180_v43, %s353_s13  ;;  %v200_v47 = vsel %vm51_vm1, %v334_v45, %v195_v44  ;;  %s246_s17 = smov 48  ;;  %s251_s18 = smov 192 }
  0x13   :  { %v336_v48 = vld [vmem:[%s550_s0 + $0x45] ss:$16 sm:%s213_s26]   ;;  %v205_v49 = vsel %vm56_vm2, %v335_v46, %v200_v47  ;;  %s354_s19 = smov 32   ;;  %v339_v53 = vld [vmem:[%s550_s0 + $0x9] ss:$16 sm:%s226_s8]  }
  0x14   :  { %v337_v50 = vld [vmem:[%s550_s0 + $0x45] ss:$16 sm:%s216_s2]   ;;  %206 = vrot.lane.b32.xlu0 %v205_v49, %s354_s19  ;;  %v2_v54 = vld [vmem:[%s550_s0] ss:$4 sm:$0x7]  }
  0x15   :  { %v219_v52 = vsel %vm46_vm0, %v337_v50, %v336_v48  ;;  %v340_v56 = vld [vmem:[%s550_s0 + $0x9] ss:$16 sm:%s238_s11]   ;;  %4 = vst.msk [vmem:[#allocation0] ss:$8 sm:$0x7] %vm3_vm3, %v2_v54  }
  0x16   :  { %v224_v55 = vsel %vm51_vm1, %v338_v51, %v219_v52  ;;  %v341_v57 = vld [vmem:[%s550_s0 + $0x9] ss:$16 sm:%s241_s12]   ;;  %v342_v60 = vld [vmem:[%s550_s0 + $0x1] ss:$16 sm:%s246_s17]  }
  0x17   :  { %v229_v58 = vsel %vm56_vm2, %v339_v53, %v224_v55  ;;  %v244_v59 = vsel %vm46_vm0, %v341_v57, %v340_v56  ;;  %v343_v61 = vld [vmem:[%s550_s0 + $0x1] ss:$16 sm:%s251_s18]   ;;  %v301_v63 = vld [vmem:[%s550_s0 + $0x10] ss:$4 sm:$0x7]  }
  0x18   :  { %230 = vrot.lane.b32.xlu1 %v229_v58, %s354_s19  ;;  %v249_v62 = vsel %vm51_vm1, %v342_v60, %v244_v59  ;;  %v302_v0 = vld [vmem:[%s550_s0 + $0x20] ss:$4 sm:$0x7]   ;;  %9 = vst.msk [vmem:[#allocation0 + $0x1] ss:$8 sm:$0x7] %vm3_vm3, %v301_v63  }
  0x19   :  { %v254_v1 = vsel %vm56_vm2, %v343_v61, %v249_v62  ;;  %14 = vst.msk [vmem:[#allocation0 + $0x2] ss:$8 sm:$0x7] %vm3_vm3, %v302_v0   ;;  %v303_v2 = vld [vmem:[%s550_s0 + $0x30] ss:$4 sm:$0x7]  }
  0x1a   :  { %v304_v3 = vld [vmem:[%s550_s0 + $0x40] ss:$4 sm:$0x7]   ;;  %255 = vrot.lane.b32.xlu0 %v254_v1, %s354_s19  ;;  %19 = vst.msk [vmem:[#allocation0 + $0x3] ss:$8 sm:$0x7] %vm3_vm3, %v303_v2  }
  0x1b   :  { %24 = vst.msk [vmem:[#allocation0 + $0x18] ss:$8 sm:$0x7] %vm3_vm3, %v304_v3   ;;  %v305_v4 = vld [vmem:[%s550_s0 + $0x50] ss:$4 sm:$0x7]  }
  0x1c   :  { %v306_v5 = vld [vmem:[%s550_s0 + $0x60] ss:$4 sm:$0x7]   ;;  %29 = vst.msk [vmem:[#allocation0 + $0x19] ss:$8 sm:$0x7] %vm3_vm3, %v305_v4  }
  0x1d   :  { %34 = vst.msk [vmem:[#allocation0 + $0x1a] ss:$8 sm:$0x7] %vm3_vm3, %v306_v5   ;;  %v307_v6 = vld [vmem:[%s550_s0 + $0x70] ss:$4 sm:$0x7]  }
  0x1e   :  { %39 = vst.msk [vmem:[#allocation0 + $0x1b] ss:$8 sm:$0x7] %vm3_vm3, %v307_v6  }
  0x78   :  { %v59_v7 = vpop.permute.xlu0 %58  }
  0x79   :  { %61 = vst.msk [vmem:[#allocation0] sm:$0xf] %vm60_vm4, %v59_v7   ;;  %63 = vst.msk [vmem:[#allocation0 + $0x4] sm:$0xf0] %vm60_vm4, %v59_v7  }
  0x7a   :  { %v108_v8 = vpop.permute.xlu1 %107  }
  0x7b   :  { %111 = vst.msk [vmem:[#allocation0 + $0x10] sm:$0xf] %vm60_vm4, %v108_v8   ;;  %113 = vst.msk [vmem:[#allocation0 + $0x14] sm:$0xf0] %vm60_vm4, %v108_v8  }
  0x7c   :  { %v83_v9 = vpop.permute.xlu0 %82  }
  0x7d   :  { %86 = vst.msk [vmem:[#allocation0 + $0x20] sm:$0xf] %vm60_vm4, %v83_v9   ;;  %88 = vst.msk [vmem:[#allocation0 + $0x24] sm:$0xf0] %vm60_vm4, %v83_v9  }
  0x7f   :  { %v133_v10 = vpop.permute.xlu1 %132  }
  0x80   :  { %135 = vst.msk [vmem:[#allocation0] sm:$0xf] %vm134_vm5, %v133_v10   ;;  %137 = vst.msk [vmem:[#allocation0 + $0x4] sm:$0xf0] %vm134_vm5, %v133_v10  }
  0x82   :  { %v157_v11 = vpop.permute.xlu0 %156  }
  0x83   :  { %160 = vst.msk [vmem:[#allocation0 + $0x20] sm:$0xf] %vm134_vm5, %v157_v11   ;;  %162 = vst.msk [vmem:[#allocation0 + $0x24] sm:$0xf0] %vm134_vm5, %v157_v11  }
  0x84   :  { %v182_v12 = vpop.permute.xlu1 %181  }
  0x85   :  { %185 = vst.msk [vmem:[#allocation0 + $0x10] sm:$0xf] %vm134_vm5, %v182_v12   ;;  %187 = vst.msk [vmem:[#allocation0 + $0x14] sm:$0xf0] %vm134_vm5, %v182_v12  }
  0x86   :  { %v207_v13 = vpop.permute.xlu0 %206  }
  0x87   :  { %209 = vst.msk [vmem:[#allocation0] sm:$0xf] %vm208_vm6, %v207_v13   ;;  %211 = vst.msk [vmem:[#allocation0 + $0x4] sm:$0xf0] %vm208_vm6, %v207_v13  }
  0x8a   :  { %v231_v14 = vpop.permute.xlu1 %230  }
  0x8b   :  { %234 = vst.msk [vmem:[#allocation0 + $0x20] sm:$0xf] %vm208_vm6, %v231_v14   ;;  %236 = vst.msk [vmem:[#allocation0 + $0x24] sm:$0xf0] %vm208_vm6, %v231_v14  }
  0x8c   :  { %v256_v15 = vpop.permute.xlu0 %255  }
  0x8d   :  { %259 = vst.msk [vmem:[#allocation0 + $0x10] sm:$0xf] %vm208_vm6, %v256_v15   ;;  %261 = vst.msk [vmem:[#allocation0 + $0x14] sm:$0xf0] %vm208_vm6, %v256_v15  }
  0x8e   :  { %v265_v16 = vld [vmem:[#allocation0] sm:$0xf]  ;;  %v269_v17 = vld [vmem:[#allocation0 + $0x8] sm:$0xf] }
  0x8f   :  { %267 = vst [vmem:[%s551_s1] sm:$0xf] %v265_v16  ;;  %344 = vst [vmem:[%s551_s1 + $0x4] sm:$0xf] %v269_v17 }
  0x92   :  { %v286_v18 = vld [vmem:[#allocation0 + $0x20] sm:$0xf]  ;;  %v292_v19 = vld [vmem:[#allocation0 + $0x28] sm:$0xf] }
  0x93   :  { %347 = vst [vmem:[%s551_s1 + $0x10] sm:$0xf] %v286_v18  ;;  %348 = vst [vmem:[%s551_s1 + $0x14] sm:$0xf] %v292_v19 }
  0x94   :  { %v274_v20 = vld [vmem:[#allocation0 + $0x10] sm:$0xf]  ;;  %v280_v21 = vld [vmem:[#allocation0 + $0x18] sm:$0xf] }
  0x95   :  { %345 = vst [vmem:[%s551_s1 + $0x8] sm:$0xf] %v274_v20  ;;  %346 = vst [vmem:[%s551_s1 + $0xc] sm:$0xf] %v280_v21 }

// kernel: qkv_field_transform.1
= control target key start
LH: loop header
LB: loop body
LE: loop exit
PB: predicated region body
PF: predicated region fallthrough
CT: control target
= control target key end

     0   :  { %s255_s9 = smov 0   ;;  %s284_s0 = inlined_call_operand.vmem [shape: f32[2,4,384], index: 0, kind: input, shape index: {}]   ;;  %s285_s1 = inlined_call_operand.vmem [shape: f32[2,4,384], index: 1, kind: input, shape index: {}]   ;;  %s286_s2 = inlined_call_operand.vmem [shape: f32[2,2,4,384], index: 2, kind: output, shape index: {}]  }
   0x1 LB: > { %s213_s10 = sadd.s32 4294967295, %s238_s9   ;;  %p217_p0 = scmp.ge.s32.totalorder %s238_s9, 1  ;;  %s238_s9 = sphi %s255_s9, %s12_s9  }
   0x2   : > { %p112_p1 = scmp.lt.s32.totalorder %s238_s9, 3 }
   0x4   : > { %p113_p2 = pnand %p217_p0, %p112_p1 }
   0x5   : > { %p134_p3 = scmp.lt.s32.totalorder (!%p113_p2), %s213_s10, 1  ;;  %v146_v0 = vld [vmem:[%s285_s1] sm:$0xff] (!%p113_p2)  ;;  %v147_v1 = vld [vmem:[%s285_s1 + $0x8] sm:$0xf] (!%p113_p2)  ;;  %v148_v2 = vld [vmem:[%s285_s1 + $0xc] sm:$0xff] (!%p113_p2) }
   0x6   : > { %116 = sbr.rel (%p113_p2) target bundleno = 22 (0x16), region = 28  ;;  %v149_v3 = vld [vmem:[%s285_s1 + $0x14] sm:$0xf] (!%p113_p2) }
   0xd   : > { %s288_s10 = smov (!%p134_p3, %s213_s10), 1 }
   0xe   : > { %s222_s11 = smul.u32 12, %s288_s10 }
   0xf   : > { %s223_s14 = smul.u32 24, %s288_s10 }
  0x10   : > { %s138_s23 = scalar_lea.vmem %s284_s0, %s222_s11 }
  0x11   : > { %s143_s26 = scalar_lea.vmem %s286_s2, %s223_s14  ;;  %v144_v4 = vld [vmem:[%s138_s23] sm:$0xff]  ;;  %v145_v5 = vld [vmem:[%s138_s23 + $0x8] sm:$0xf] }
  0x12   : > { %v150_v6 = vmul.f32 %v146_v0, %v144_v4  ;;  %v151_v7 = vmul.f32 %v147_v1, %v145_v5  ;;  %v152_v8 = vmul.f32 %v148_v2, %v144_v4  ;;  %v153_v9 = vmul.f32 %v149_v3, %v145_v5 }
  0x14   : > { %154 = vst [vmem:[%s143_s26] sm:$0xff] %v150_v6  ;;  %155 = vst [vmem:[%s143_s26 + $0x8] sm:$0xf] %v151_v7 }
  0x15   : > { %156 = vst [vmem:[%s143_s26 + $0xc] sm:$0xff] %v152_v8  ;;  %157 = vst [vmem:[%s143_s26 + $0x14] sm:$0xf] %v153_v9 }
  0x16 PF: > { %s12_s9 = sadd.s32 1, %s238_s9  }
  0x17   : > { %p9_p4 = scmp.ge.s32.totalorder %s12_s9, 4  }
  0x19   :  { %11 = sbr.rel (!%p9_p4) target bundleno = 1 (0x1), region = 58 }

</bundles_post_ra>
